<compile_context>
chip_gen: v7x
topology: tpu7x:2x2x1
jax: 0.10.0
libtpu: 0.0.40
codegen_flags: <defaults>
</compile_context>

<pallas_src>
import functools

import numpy as np
import jax
import jax.numpy as jnp
from jax.experimental import pallas as pl
from jax.experimental.pallas import tpu as pltpu


# ----------------------------------------------------------------------------
# Per-generation knobs.
# ----------------------------------------------------------------------------
def _vmem_limit_bytes():
    """Scoped-VMEM hint: ~3/4 of physical, capped at 100 MiB.
    v5e/v6e (128 MiB physical) -> ~96-100 MiB; v7x (64 MiB) -> 48 MiB."""
    try:
        cap = int(pltpu.get_tpu_info().vmem_capacity_bytes)
    except Exception:
        cap = 64 << 20
    return max(32 << 20, min(cap * 3 // 4, 100 << 20))


def _chunk_windows(kk):
    """Windows per store/matmul chunk: ~128 output lanes on v5e (single vst
    slot, 128-wide MXU), ~256 lanes on v6e/v7x (256-wide MXU)."""
    try:
        kind = jax.devices()[0].device_kind.lower()
    except Exception:
        kind = ""
    lanes = 128 if "v5" in kind else 256
    return max(1, lanes // kk)


# ----------------------------------------------------------------------------
# Kernel 1: per-window "any(mask != 0)" reduction, one batch per grid step.
# ----------------------------------------------------------------------------
def _window_any_kernel(r_ref, c_ref, mask_ref, out_ref):
    # One-hot pooling matmuls; bf16 operands are exact for 0/1 values and the
    # small integer counts (<= k*k <= 256), accumulation stays f32.
    nz = (mask_ref[0] != 0.0).astype(jnp.bfloat16)                       # (H, W)
    t = jnp.dot(r_ref[...], nz, preferred_element_type=jnp.float32)     # (Hk, W)
    wsum = jnp.dot(t.astype(jnp.bfloat16), c_ref[...],
                   preferred_element_type=jnp.float32)                  # (Hk, Wk)
    out_ref[0] = (wsum > 0.0).astype(jnp.int32)


def window_any(mask, k):
    """mask: (B, 1, H, W) -> (B, N) int32; window n = row * (W//k) + col."""
    B, _, H, W = mask.shape
    Hk, Wk = H // k, W // k
    m2 = mask.reshape(B, H, W)
    # Pooling one-hots as constant inputs (constant index_map -> single DMA,
    # kept resident) instead of rebuilding iotas every grid step.
    R = jnp.asarray(((np.arange(H)[None, :] // k) == np.arange(Hk)[:, None])
                    .astype(np.float32), dtype=jnp.bfloat16)             # (Hk, H)
    Cm = jnp.asarray(((np.arange(W)[:, None] // k) == np.arange(Wk)[None, :])
                     .astype(np.float32), dtype=jnp.bfloat16)            # (W, Wk)
    out = pl.pallas_call(
        _window_any_kernel,
        grid=(B,),
        in_specs=[pl.BlockSpec((Hk, H), lambda b: (0, 0)),
                  pl.BlockSpec((W, Wk), lambda b: (0, 0)),
                  pl.BlockSpec((1, H, W), lambda b: (b, 0, 0))],
        out_specs=pl.BlockSpec((1, Hk, Wk), lambda b: (b, 0, 0)),
        out_shape=jax.ShapeDtypeStruct((B, Hk, Wk), jnp.int32),
        compiler_params=pltpu.CompilerParams(dimension_semantics=("parallel",)),
    )(R, Cm, m2)
    return out.reshape(B, Hk * Wk)


# ----------------------------------------------------------------------------
# Kernel 2: fused ones+zeros window gather (chunked block-diagonal matmuls).
#   band[c, w*W + j]        = x[b, c, r*k + w, j]
#   patch[c, w*k + h]       = band[c, w*W + (n % Wk)*k + h]
#   out[b, c, m*kk + wh]    = patch of the m-th selected window
# ----------------------------------------------------------------------------
def _gather_pair_kernel(ones_idx_ref, zeros_idx_ref, sel_ref, x_ref,
                        ones_ref, zeros_ref, bands_ref, diag_ref, *, k, Wk, chunk):
    b = pl.program_id(0)
    kk = k * k
    kW = sel_ref.shape[1]                       # k * W
    # Only the diagonal (kW, kk) blocks of diag_ref are rewritten per chunk, so
    # zero the off-diagonal blocks once per grid step.
    diag_ref[...] = jnp.zeros_like(diag_ref)

    def emit(idx_ref, out_ref):
        n_pad = idx_ref.shape[1]                # padded to a multiple of chunk
        # TODO(synk): for production n_sel (hundreds of windows) switch this to
        # a lax.fori_loop over chunks with pl.ds output offsets to avoid a big
        # static unroll; demo shapes give a single chunk per side.
        for c in range(n_pad // chunk):
            for m in range(chunk):              # short static inner unroll
                n = idx_ref[b, c * chunk + m]
                r = n // Wk                     # window row
                cb = n % Wk                     # window column block
                # (C, kW) row band: Hk is an un-tiled array dim of x_ref, so a
                # dynamic r is pure address offsetting (no sublane gather).
                bands_ref[:, m * kW:(m + 1) * kW] = x_ref[0, r]
                # Precomputed column-selection one-hot for column block cb.
                diag_ref[m * kW:(m + 1) * kW, m * kk:(m + 1) * kk] = sel_ref[cb]
            # ONE MXU matmul per chunk of windows:
            #   (C, chunk*kW) x (chunk*kW, chunk*kk) -> (C, chunk*kk)
            # kept in f32 throughout so the one-hot gather is bit-exact.
            slab = jnp.dot(bands_ref[...], diag_ref[...],
                           preferred_element_type=jnp.float32)
            # Single lane-dense store per chunk (128/256 lanes wide).
            out_ref[0, :, c * chunk * kk:(c + 1) * chunk * kk] = (
                slab.astype(out_ref.dtype))

    emit(ones_idx_ref, ones_ref)
    emit(zeros_idx_ref, zeros_ref)


def _build_sel_all(k, W):
    """(Wk, k*W, k*k) one-hot: sel[cb, w*W + j, w2*k + h] = (w==w2)&(j==cb*k+h)."""
    kW, kk, Wk = k * W, k * k, W // k
    row_w = np.arange(kW)[:, None] // W
    row_j = np.arange(kW)[:, None] % W
    col_w = np.arange(kk)[None, :] // k
    col_h = np.arange(kk)[None, :] % k
    same_w = row_w == col_w
    sel = np.stack([(same_w & (row_j == cb * k + col_h)) for cb in range(Wk)])
    return jnp.asarray(sel.astype(np.float32))


def _pad_idx(idx, chunk):
    B, n = idx.shape
    n_pad = ((max(n, 1) + chunk - 1) // chunk) * chunk
    if n_pad > n:
        idx = jnp.concatenate([idx, jnp.zeros((B, n_pad - n), jnp.int32)], axis=1)
    return idx


def gather_pair(x4, sel_all, ones_idx, zeros_idx, k, W, out_dtype):
    """x4: (B, Hk, C, k*W); idx tables (B, n) int32 ->
       ((B, k*k, C*n_ones), (B, k*k, C*n_zeros))."""
    B, Hk, C, kW = x4.shape
    Wk = W // k
    kk = k * k
    chunk = _chunk_windows(kk)
    n_ones, n_zeros = int(ones_idx.shape[1]), int(zeros_idx.shape[1])
    ia = _pad_idx(ones_idx, chunk)              # padded with window 0; sliced off
    ib = _pad_idx(zeros_idx, chunk)
    n_a, n_b = int(ia.shape[1]), int(ib.shape[1])

    # TODO(synk): for production (C, H, W) add a 'parallel' C-tiling grid axis
    # (mainly for v7x's 64 MiB VMEM and its 2 TensorCores); the demo block is tiny.
    grid_spec = pltpu.PrefetchScalarGridSpec(
        num_scalar_prefetch=2,
        grid=(B,),
        in_specs=[pl.BlockSpec((Wk, kW, kk), lambda b, oi, zi: (0, 0, 0)),
                  pl.BlockSpec((1, Hk, C, kW), lambda b, oi, zi: (b, 0, 0, 0))],
        out_specs=[pl.BlockSpec((1, C, n_a * kk), lambda b, oi, zi: (b, 0, 0)),
                   pl.BlockSpec((1, C, n_b * kk), lambda b, oi, zi: (b, 0, 0))],
        scratch_shapes=[pltpu.VMEM((C, chunk * kW), out_dtype),
                        pltpu.VMEM((chunk * kW, chunk * kk), jnp.float32)],
    )
    raw_a, raw_b = pl.pallas_call(
        functools.partial(_gather_pair_kernel, k=k, Wk=Wk, chunk=chunk),
        grid_spec=grid_spec,
        out_shape=(jax.ShapeDtypeStruct((B, C, n_a * kk), out_dtype),
                   jax.ShapeDtypeStruct((B, C, n_b * kk), out_dtype)),
        compiler_params=pltpu.CompilerParams(
            dimension_semantics=("parallel",),
            vmem_limit_bytes=_vmem_limit_bytes()),
    )(ia, ib, sel_all, x4)

    def finish(raw, n_sel):
        if n_sel == 0:
            return jnp.zeros((B, kk, 0), out_dtype)
        # TODO(synk): this final permutation is a second HBM pass over the
        # outputs; it can be folded into the kernel (one XLU transpose per wide
        # chunk) at the cost of a more fragile store layout.
        return (raw[:, :, :n_sel * kk]
                .reshape(B, C, n_sel, kk)
                .transpose(0, 3, 1, 2)
                .reshape(B, kk, C * n_sel))

    return finish(raw_a, n_ones), finish(raw_b, n_zeros)


# ----------------------------------------------------------------------------
# Forward wrapper (equivalent of local_scan_zero_ones.forward)
# ----------------------------------------------------------------------------
def local_scan_zero_ones_forward(mask, x, window_size):
    B, C, H, W = x.shape
    k = window_size
    # Dispatch the mask reduction + count first so the unavoidable host sync
    # below overlaps the x-side preparation (transpose + sel_all build).
    win = window_any(mask, k)                                 # (B, N) int32
    counts_dev = jnp.sum(win, axis=1)
    # x presented as (B, Hk, C, k*W): dynamic window-row indexing then lands on
    # an un-tiled array dim inside the kernel.
    x4 = x.reshape(B, C, H // k, k * W).transpose(0, 2, 1, 3)
    sel_all = _build_sel_all(k, W)
    # TODO(synk): torch's boolean indexing makes the output width data
    # dependent; only this per-batch count crosses to the host.
    counts = np.asarray(jax.device_get(counts_dev))
    n_ones = int(counts[0])
    assert all(int(c) == n_ones for c in counts), \
        "per-batch 'ones' window counts must match (required by torch .view)"
    # Stable sort: 'one' windows first, each group in ascending window order,
    # matching torch boolean-indexing order.
    order = jnp.argsort(1 - win, axis=1, stable=True).astype(jnp.int32)
    ones_idx = order[:, :n_ones]
    zeros_idx = order[:, n_ones:]
    return gather_pair(x4, sel_all, ones_idx, zeros_idx, k, W, x.dtype)


# ----------------------------------------------------------------------------
# Pure-numpy reference of the PyTorch module (correctness check only).
# ----------------------------------------------------------------------------
def ref_forward(mask, x, k):
    B, C, H, W = x.shape
    Hk, Wk = H // k, W // k
    N = Hk * Wk
    xr = x.reshape(B, C, Hk, k, Wk, k)                       # b c r w cc h
    xu = xr.transpose(0, 1, 3, 5, 2, 4).reshape(B, C * k * k, N)
    xre = xu.reshape(B, C, k * k, N).transpose(0, 2, 1, 3).reshape(B, k * k, C * N)
    m = mask[:, 0]
    mr = m.reshape(B, Hk, k, Wk, k).transpose(0, 2, 4, 1, 3).reshape(B, k * k, N)
    win = (mr != 0).any(axis=1)                              # (B, N)
    img_mask = np.tile(win, (1, C))                          # (B, C*N)
    ones_l, zeros_l = [], []
    for b in range(B):
        ones_l.append(xre[b][:, np.nonzero(img_mask[b])[0]])
        zeros_l.append(xre[b][:, np.nonzero(~img_mask[b])[0]])
    return np.stack(ones_l), np.stack(zeros_l)


if __name__ == "__main__":
    B, C, H, W = 2, 4, 16, 16
    k = 4
    Hk, Wk = H // k, W // k
    N = Hk * Wk

    key = jax.random.PRNGKey(0)
    kx, km = jax.random.split(key)
    x = jax.random.normal(kx, (B, C, H, W), dtype=jnp.float32)

    # Deterministic window flags with equal per-batch counts (needed for .view):
    # batch 0 -> first half of the windows, batch 1 -> every other window.
    flags = np.zeros((B, N), dtype=np.float32)
    flags[0, : N // 2] = 1.0
    flags[1, ::2] = 1.0
    # A single nonzero pixel inside each flagged window (exercises .any()).
    mask_np = np.zeros((B, 1, H, W), dtype=np.float32)
    mags = np.asarray(jax.random.uniform(km, (B, N), minval=0.5, maxval=1.5))
    for b in range(B):
        for n in range(N):
            if flags[b, n] > 0:
                r, c = divmod(n, Wk)
                mask_np[b, 0, r * k + 1, c * k + 2] = mags[b, n]
    mask = jnp.asarray(mask_np)

    ones_out, zeros_out = local_scan_zero_ones_forward(mask, x, k)
    ones_out = jax.block_until_ready(ones_out)
    zeros_out = jax.block_until_ready(zeros_out)

    ref_ones, ref_zeros = ref_forward(mask_np, np.asarray(x), k)
    assert ones_out.shape == ref_ones.shape == (B, k * k, C * (N // 2))
    assert zeros_out.shape == ref_zeros.shape == (B, k * k, C * (N // 2))
    np.testing.assert_allclose(np.asarray(ones_out), ref_ones, rtol=1e-5, atol=1e-5)
    np.testing.assert_allclose(np.asarray(zeros_out), ref_zeros, rtol=1e-5, atol=1e-5)
    print("KERNEL_OK")
</pallas_src>

<mosaic_0001>
module attributes {stable_mosaic.version = 11 : i64} {
  func.func @_window_any_kernel(%arg0: i32, %arg1: memref<4x16xbf16, #tpu.memory_space<vmem>>, %arg2: memref<16x4xbf16, #tpu.memory_space<vmem>>, %arg3: memref<1x16x16xf32, #tpu.memory_space<vmem>>, %arg4: memref<1x4x4xi32, #tpu.memory_space<vmem>>) attributes {dimension_semantics = [#tpu.dimension_semantics<parallel>], iteration_bounds = array<i64: 2>, scalar_prefetch = 0 : i64, scratch_operands = 0 : i64, tpu.core_type = #tpu.core_type<tc>, window_params = [{pipeline_mode = #tpu.pipeline_mode<synchronous>, transform_indices = @transform_0, window_bounds = array<i64: 4, 16>}, {pipeline_mode = #tpu.pipeline_mode<synchronous>, transform_indices = @transform_1, window_bounds = array<i64: 16, 4>}, {transform_indices = @transform_2, window_bounds = array<i64: 1, 16, 16>}, {transform_indices = @transform_3, window_bounds = array<i64: 1, 4, 4>}]} {
    %c0 = arith.constant 0 : index
    %c0_0 = arith.constant 0 : index
    %c0_1 = arith.constant 0 : index
    %0 = vector.load %arg3[%c0, %c0_0, %c0_1] : memref<1x16x16xf32, #tpu.memory_space<vmem>>, vector<1x16x16xf32>
    %1 = vector.shape_cast %0 : vector<1x16x16xf32> to vector<16x16xf32>
    %cst = arith.constant 0.000000e+00 : f32
    %2 = vector.broadcast %cst : f32 to vector<16x16xf32>
    %3 = arith.cmpf one, %1, %2 : vector<16x16xf32>
    %4 = arith.extui %3 : vector<16x16xi1> to vector<16x16xi32>
    %5 = arith.sitofp %4 : vector<16x16xi32> to vector<16x16xf32>
    %6 = arith.truncf %5 : vector<16x16xf32> to vector<16x16xbf16>
    %c0_2 = arith.constant 0 : index
    %c0_3 = arith.constant 0 : index
    %7 = vector.load %arg1[%c0_2, %c0_3] : memref<4x16xbf16, #tpu.memory_space<vmem>>, vector<4x16xbf16>
    %cst_4 = arith.constant dense<0.000000e+00> : vector<4x16xf32>
    %8 = tpu.matmul %7, %6, %cst_4 {dimension_numbers = #tpu.dot_dimension_numbers<[1], [0], [0], [1], [0, 0, 1, 1], [], []>} : vector<4x16xbf16>, vector<16x16xbf16>, vector<4x16xf32> -> vector<4x16xf32>
    %9 = arith.truncf %8 : vector<4x16xf32> to vector<4x16xbf16>
    %c0_5 = arith.constant 0 : index
    %c0_6 = arith.constant 0 : index
    %10 = vector.load %arg2[%c0_5, %c0_6] : memref<16x4xbf16, #tpu.memory_space<vmem>>, vector<16x4xbf16>
    %cst_7 = arith.constant dense<0.000000e+00> : vector<4x4xf32>
    %11 = tpu.matmul %9, %10, %cst_7 {dimension_numbers = #tpu.dot_dimension_numbers<[1], [0], [0], [1], [0, 0, 1, 1], [], []>} : vector<4x16xbf16>, vector<16x4xbf16>, vector<4x4xf32> -> vector<4x4xf32>
    %cst_8 = arith.constant 0.000000e+00 : f32
    %12 = vector.broadcast %cst_8 : f32 to vector<4x4xf32>
    %13 = arith.cmpf ogt, %11, %12 : vector<4x4xf32>
    %14 = arith.extui %13 : vector<4x4xi1> to vector<4x4xi32>
    %c0_9 = arith.constant 0 : index
    %c0_10 = arith.constant 0 : index
    %c0_11 = arith.constant 0 : index
    %15 = vector.load %arg4[%c0_9, %c0_10, %c0_11] : memref<1x4x4xi32, #tpu.memory_space<vmem>>, vector<1x4x4xi32>
    %16 = vector.shape_cast %15 : vector<1x4x4xi32> to vector<4x4xi32>
    %17 = vector.shape_cast %14 : vector<4x4xi32> to vector<1x4x4xi32>
    tpu.vector_store %arg4[%c0_9, %c0_10, %c0_11], %17 {strides = array<i32>} : memref<1x4x4xi32, #tpu.memory_space<vmem>>, vector<1x4x4xi32>,
    return
  }
  func.func @transform_0(%arg0: i32) -> (i32, i32) {
    %c0_i32 = arith.constant 0 : i32
    %c0_i32_0 = arith.constant 0 : i32
    %c0_i32_1 = arith.constant 0 : i32
    return %c0_i32, %c0_i32_0 : i32, i32
  }
  func.func @transform_1(%arg0: i32) -> (i32, i32) {
    %c0_i32 = arith.constant 0 : i32
    %c0_i32_0 = arith.constant 0 : i32
    %c0_i32_1 = arith.constant 0 : i32
    return %c0_i32, %c0_i32_0 : i32, i32
  }
  func.func @transform_2(%arg0: i32) -> (i32, i32, i32) {
    %c0_i32 = arith.constant 0 : i32
    %c0_i32_0 = arith.constant 0 : i32
    %c0_i32_1 = arith.constant 0 : i32
    return %arg0, %c0_i32, %c0_i32_0 : i32, i32, i32
  }
  func.func @transform_3(%arg0: i32) -> (i32, i32, i32) {
    %c0_i32 = arith.constant 0 : i32
    %c0_i32_0 = arith.constant 0 : i32
    %c0_i32_1 = arith.constant 0 : i32
    return %arg0, %c0_i32, %c0_i32_0 : i32, i32, i32
  }
}

</mosaic_0001>

<bundles_post_ra>
// kernel: tpu_custom_call.1
= control target key start
LH: loop header
LB: loop body
LE: loop exit
PB: predicated region body
PF: predicated region fallthrough
CT: control target
= control target key end

     0   :  { %8 = vsyncpa [#allocation3], 0  ;;  %s767_s0 = inlined_call_operand.vmem [shape: bf16[4,16], index: 0, kind: input, shape index: {}]   ;;  %s768_s1 = inlined_call_operand.vmem [shape: bf16[16,4], index: 1, kind: input, shape index: {}]   ;;  %s769_s2 = inlined_call_operand.hbm [shape: f32[2,16,16], index: 2, kind: input, shape index: {}]   ;;  %s770_s3 = inlined_call_operand.hbm [shape: s32[2,4,4], index: 3, kind: output, shape index: {}]  }
   0x1   :  { %10 = vsyncpa [#allocation3 + $0x1], 0 }
   0x2   :  { %11 = vsyncpa [#allocation4], 0 }
   0x3   :  { %13 = vsyncpa [#allocation4 + $0x1], 0  ;;  %s600_s12 = smov 0   ;;  %s602_s13 = smov 0  }
   0x4   :  { %s604_s14 = smov 0   ;;  %s606_s15 = smov 0  }
   0x5 LB: > { %s621_s16 = sadd.s32 4294967295, %s570_s15   ;;  %s384_s17 = sadd.s32 4294967294, %s570_s15   ;;  %s570_s15 = sphi %s606_s15, %s783_s15   ;;  %s566_s14 = sphi %s604_s14, %s782_s14   ;;  %s562_s13 = sphi %s602_s13, %s781_s13   ;;  %s558_s12 = sphi %s600_s12, %s780_s12  }
   0x6   : > { %s625_s18 = sadd.s32 1, %s570_s15   ;;  %s68_s19 = sadd.s32 1, %s566_s14 }
   0x7   : > { %s65_s20 = ssub.s32 %s570_s15, %s625_s18  ;;  %p75_p0 = scmp.ne.s32.totalorder %s566_s14, %s562_s13 }
   0x8   : > { %p66_p1 = scmp.eq.s32.totalorder %s65_s20, 0  ;;  %p76_p2 = scmp.eq.s32.totalorder %s570_s15, 0 }
   0x9   : > { %p81_p3 = scmp.ne.s32.totalorder %s562_s13, %s558_s12  ;;  %p82_p4 = scmp.eq.s32.totalorder %s621_s16, 0 }
   0xa   : > { %s637_s21 = scalar_select %p66_p1, %s566_s14, %s68_s19  }
   0xb   : > { %p639_p5 = por %p76_p2, %p75_p0  ;;  %p643_p6 = por %p82_p4, %p81_p3 }
   0xc   : > { %p105_p7 = scmp.eq.s32.totalorder %s621_s16, 1  ;;  %p111_p8 = scmp.eq.s32.totalorder %s384_s17, 1 }
   0xd   : > { %p433_p10 = scmp.lt.s32.totalorder %s570_s15, 2  ;;  %s137_s26 = sand.u32 1, %s566_s14  }
   0xe   : > { %p650_p11 = por %p105_p7, %p75_p0  ;;  %p654_p12 = por %p111_p8, %p81_p3 }
   0xf   : > { %s404_s27 = sshll.u32 %s570_s15, 8  ;;  %s387_s28 = sshll.u32 %s137_s26, 4 }
  0x10   : > { %s774_s24 = scalar_select %p650_p11, 1, 0 }
  0x11   : > { %s775_s25 = scalar_select %p654_p12, 1, 0 }
  0x12   : > { %s663_s4 = scalar_lea.hbm %s769_s2, %s404_s27  ;;  %s141_s5 = scalar_lea.vmem [#allocation2], %s387_s28 }
  0x13   : > { %s148_s6 = sshll.u32 %s141_s5, 4  ;;  %p667_p13 = pnand %p433_p10, %p639_p5  ;;  %s671_s6 = int_to_ptr.vmem [resolvable:$true] %s148_s6 }
  0x14   : > { %s673_s8 = scalar_lea.sflag [#allocation3], %s137_s26  ;;  %s474_s9 = scalar_lea.hbm %s663_s4, 256 }
  0x15   : > { %p475_p0 = scmp.ne.s32.totalorder %s663_s4, %s474_s9  ;;  %p476_p1 = pneg %p667_p13 }
  0x16   : > { %s479_s17 = scalar_lea.hbm %s769_s2, 512  ;;  %p480_p4 = scmp.lt.u32.totalorder %s663_s4, %s769_s2 }
  0x17   : > { %p477_p2 = pnand %p476_p1, %p475_p0  ;;  %p481_p5 = scmp.lt.u32.totalorder %s479_s17, %s474_s9 }
  0x18   : > { %p483_p8 = scmp.lt.u32.totalorder %s474_s9, %s663_s4 }
  0x19   : > { %p478_p3 = pneg %p477_p2  ;;  %p482_p7 = por %p481_p5, %p480_p4 }
  0x1b   : > { %p484_p10 = por %p483_p8, %p482_p7 }
  0x1d   : > { %p485_p9 = pnand %p484_p10, %p478_p3 }
  0x1f   : > { %488 = shalt.err (!%p485_p9)
}
  0x20   : > { %s489_s22 = scalar_lea.vmem %s671_s6, 256  ;;  %s572_s26 = smov [#allocation2]  }
  0x21   : > { %p490_p0 = scmp.ne.s32.totalorder %s671_s6, %s489_s22  ;;  %s494_s27 = sshll.u32 %s572_s26, 4  ;;  %s495_s27 = int_to_ptr.vmem [resolvable:$false] %s494_s27 }
  0x22   : > { %s496_s28 = scalar_lea.vmem %s495_s27, 512  ;;  %p497_p11 = scmp.lt.s32.totalorder %s671_s6, %s495_s27 }
  0x23   : > { %p492_p2 = pnand %p490_p0, %p476_p1  ;;  %p498_p4 = scmp.lt.s32.totalorder %s496_s28, %s489_s22 }
  0x25   : > { %p493_p12 = pneg %p492_p2  ;;  %p499_p5 = por %p498_p4, %p497_p11 }
  0x27   : > { %p500_p7 = pnand %p499_p5, %p493_p12 }
  0x29   : > { %503 = shalt.err (!%p500_p7)
}
  0x2a   : > { %s573_s29 = smov 128   ;;  %s574_s30 = smov 8  }
  0x2b   : > { %428 = dma.hbm_to_vmem [thread:$0]  (!%p667_p13), %s663_s4, 256, %s671_s6, %s673_s8, %s573_s29, %s573_s29, %s574_s30  }
  0x2c   : > { %p390_p9 = scmp.ge.s32.totalorder %s570_s15, 1  ;;  %p156_p1 = scmp.lt.s32.totalorder %s570_s15, 3 }
  0x2e   : > { %p157_p3 = pnand %p390_p9, %p156_p1 }
  0x2f   : > { %s704_s5 = sand.u32 (!%p157_p3), 1, %s562_s13  }
  0x30   : > { %160 = sbr.rel (%p157_p3) target bundleno = 504 (0x1f8), region = 32  ;;  %s391_s9 = sshll.u32 (!%p157_p3), %s704_s5, 4 }
  0x31   : > { %s163_s10 = scalar_lea.sflag (!%p157_p3), [#allocation3], %s704_s5  ;;  %s166_s11 = scalar_lea.vmem (!%p157_p3), [#allocation2], %s391_s9 }
  0x37   : > { %549 = dma.done.wait (%p643_p6), %s163_s10, 256  }
  0x38   : > { %551 = vsyncadd (%p643_p6), %s163_s10, 4294967040  ;;  %v575_v0 = vmov 0.0   ;;  %vm576_vm0 = vmmov 0   ;;  %v190_v1 = vld [vmem:[%s166_s11] sm:$0xff]  ;;  %v191_v2 = vld [vmem:[%s166_s11 + $0x8] sm:$0xff]  ;;  %vm200_vm4 = vcmask 130048  }
  0x39   : > { %409 = vmatprep.subr.bf16.mxu0 %v575_v0  ;;  %411 = vmatprep.mubr.msk.bf16.mxu0 %vm576_vm0, %v575_v0  ;;  %vm192_vm1 = vcmp.ne.f32.partialorder %v190_v1, 0.0  ;;  %vm193_vm2 = vcmp.ne.f32.partialorder %v191_v2, 0.0  ;;  %v577_v3 = vmov 1.0|1.0   ;;  %v199_v4 = vld [vmem:[%s767_s0] sm:$0x3] }
  0x3a   : > { %415 = vmatprep.subr.bf16.mxu1 %v575_v0  ;;  %417 = vmatprep.mubr.msk.bf16.mxu1 %vm576_vm0, %v575_v0  ;;  %vm395_vm3 = vmpackc.low %vm193_vm2, %vm192_vm1  ;;  %v473_v5 = vld [vmem:[%s768_s1] sm:$0xff]   ;;  %s392_s8 = sshll.u32 %s704_s5, 2  ;;  %s401_s17 = sshll.u32 %s621_s16, 6  ;;  %vm298_vm5 = vcmask 27648   ;;  %v578_v13 = vmov 0  }
  0x3b   : > { %410 = vmatpush3.bf16.msk.msra.mxu0 %vm395_vm3, %v577_v3  ;;  %416 = vmatpush3.bf16.msra.mxu1 %v473_v5  ;;  %s188_s19 = scalar_lea.vmem [#allocation5], %s392_s8  ;;  %s723_s27 = scalar_lea.hbm %s770_s3, %s401_s17 }
  0x3c   : > { %s314_s20 = sshll.u32 %s188_s19, 4  ;;  %s301_s16 = scalar_lea.sflag [#allocation4], %s704_s5  ;;  %s725_s20 = int_to_ptr.vmem [resolvable:$true] %s314_s20 }
  0x3d   : > { %s504_s28 = scalar_lea.vmem %s725_s20, 64  ;;  %p777_p11 = scmp.ne.s32.totalorder %s774_s24, 0 }
  0x3e   : > { %412 = vmatmul.mubr.msk.bf16.vlgmr.msra.gmra.mrb[0].mxu0 %vm200_vm4, %v199_v4  ;;  %p505_p6 = scmp.ne.s32.totalorder %s725_s20, %s504_s28  ;;  %s579_s29 = smov [#allocation5]  }
  0x3f   : > { %s508_s30 = sshll.u32 %s579_s29, 4  ;;  %s509_s30 = int_to_ptr.vmem [resolvable:$false] %s508_s30 }
  0x40   : > { %p506_p12 = pnand %p505_p6, %p777_p11  ;;  %s510_s9 = scalar_lea.vmem %s509_s30, 128 }
  0x41   : > { %p511_p8 = scmp.lt.s32.totalorder %s725_s20, %s509_s30  ;;  %p512_p10 = scmp.lt.s32.totalorder %s510_s9, %s504_s28 }
  0x42   : > { %p507_p13 = pneg %p506_p12 }
  0x43   : > { %p513_p0 = por %p512_p10, %p511_p8 }
  0x45   : > { %p514_p2 = pnand %p513_p0, %p507_p13 }
 0x111   : > { %v238_v6 = vpop.f32.mrb[0].mxu0 }
 0x112   : > { %v244_v7 = vpack.c.bf16 %v238_v6, %v238_v6  ;;  %v413_v8 = vpop.f32.mrb[1].mxu0 }
 0x113   : > { %v241_v9 = vpop.f32.mrb[2].mxu0 }
 0x114   : > { %v414_v10 = vpop.f32.mrb[3].mxu0  ;;  %418 = vmatmul.mubr.msk.bf16.vlgmr.msra.gmra.mrb[0].mxu1 %vm200_vm4, %v244_v7 }
 0x1e7   : > { %v290_v11 = vpop.f32.mrb[0].mxu1 }
 0x1e8   : > { %vm296_vm6 = vcmp.gt.f32.partialorder %v290_v11, 0.0  ;;  %v419_v12 = vpop.f32.mrb[1].mxu1 }
 0x1e9   : > { %v297_v14 = vsel %vm296_vm6, 1, %v578_v13  ;;  %v293_v15 = vpop.f32.mrb[2].mxu1 }
 0x1ea   : > { %299 = vst.msk [vmem:[%s188_s19] sm:$0xf] %vm298_vm5, %v297_v14  ;;  %v420_v16 = vpop.f32.mrb[3].mxu1 }
 0x1eb   : > { %517 = shalt.err (!%p514_p2)
}
 0x1ec   : > { %s518_s5 = scalar_lea.hbm %s723_s27, 64  ;;  %s522_s4 = scalar_lea.hbm %s770_s3, 128 }
 0x1ed   : > { %p519_p4 = scmp.ne.s32.totalorder %s723_s27, %s518_s5  ;;  %p523_p9 = scmp.lt.u32.totalorder %s723_s27, %s770_s3 }
 0x1ee   : > { %p524_p1 = scmp.lt.u32.totalorder %s522_s4, %s518_s5  ;;  %p526_p6 = scmp.lt.u32.totalorder %s518_s5, %s723_s27 }
 0x1ef   : > { %p520_p5 = pnand %p519_p4, %p777_p11 }
 0x1f0   : > { %p525_p3 = por %p524_p1, %p523_p9 }
 0x1f1   : > { %p521_p7 = pneg %p520_p5 }
 0x1f2   : > { %p527_p12 = por %p526_p6, %p525_p3 }
 0x1f4   : > { %p528_p13 = pnand %p527_p12, %p521_p7 }
 0x1f6   : > { %531 = shalt.err (!%p528_p13)
}
 0x1f7   : > { %423 = dma.vmem_to_hbm [thread:$0]  (%p777_p11), %s725_s20, 64, %s723_s27, %s301_s16  }
 0x1f8 PF: > { %s326_s7 = sand.u32 1, %s558_s12   ;;  %p778_p8 = scmp.ne.s32.totalorder %s775_s25, 0 }
 0x1f9   : > { %p779_p10 = scmp.ge.s32.totalorder %s570_s15, 2  ;;  %s327_s8 = scalar_lea.sflag [#allocation4], %s326_s7 }
 0x1fb   : > { %p430_p0 = pnand %p779_p10, %p778_p8 }
 0x1fd   : > { %553 = dma.done.wait (!%p430_p0), %s327_s8, 64  }
 0x1fe   : > { %555 = vsyncadd (!%p430_p0), %s327_s8, 4294967232  ;;  %p16_p2 = scmp.ge.s32.totalorder %s625_s18, 4   ;;  %s780_s12 = smov %s562_s13 }
 0x1ff   : > { %s781_s13 = smov %s566_s14  ;;  %s782_s14 = smov %s637_s21 }
 0x200   : > { %s783_s15 = smov %s625_s18  ;;  %18 = sbr.rel (!%p16_p2) target bundleno = 5 (0x5), region = 77 }
 0x207   :  { %332 = vsyncpa [#allocation3], 1 }
 0x208   :  { %334 = vsyncpa [#allocation3 + $0x1], 1 }
 0x209   :  { %335 = vsyncpa [#allocation4], 1 }
 0x20a   :  { %337 = vsyncpa [#allocation4 + $0x1], 1 }

</bundles_post_ra>
